<compile_context>
chip_gen: v7x
topology: tpu7x:2x2x1
jax: 0.10.0
libtpu: 0.0.40
codegen_flags: <defaults>
</compile_context>

<pallas_src>
import functools

import jax
import jax.numpy as jnp
from jax import lax
from jax.experimental import pallas as pl
from jax.experimental.pallas import tpu as pltpu


# ---------------------------------------------------------------------------
# In-kernel helpers (only exp / mul / add / rsqrt / where -> clean Mosaic
# lowering; lax.erf has no TPU-Pallas lowering, so exact GELU uses the
# Abramowitz & Stegun erf polynomial, |err| <= 1.5e-7).  Kept in f32 even when
# matmul operands are bf16 (review correctness note).
# ---------------------------------------------------------------------------
def _erf(z):
    a1, a2, a3, a4, a5 = (0.254829592, -0.284496736, 1.421413741,
                          -1.453152027, 1.061405429)
    p = 0.3275911
    za = jnp.abs(z)
    t = 1.0 / (1.0 + p * za)
    poly = ((((a5 * t + a4) * t + a3) * t + a2) * t + a1) * t
    y = 1.0 - poly * jnp.exp(-za * za)
    return jnp.where(z < 0.0, -y, y)


def _gelu_exact(x):
    # matches PyTorch nn.GELU() (erf form) to ~1e-7 in f32
    return 0.5 * x * (1.0 + _erf(x * 0.7071067811865476))


def _layernorm(x, gamma, beta, eps):
    mu = jnp.mean(x, axis=-1, keepdims=True)
    xc = x - mu
    var = jnp.mean(xc * xc, axis=-1, keepdims=True)
    return xc * lax.rsqrt(var + eps) * gamma + beta


def _const_index(b, m, *, ndim):
    return (0,) * ndim


# ---------------------------------------------------------------------------
# Fused Block kernel: one grid step == (batch element, query tile).
# ---------------------------------------------------------------------------
def _block_kernel(*refs, num_heads, scale, eps, has_qkv_bias, block_m,
                  mxu_dtype):
    it = iter(refs)
    x_ref, mask_ref = next(it), next(it)
    g1_ref, be1_ref = next(it), next(it)
    wq_ref, wkv_ref = next(it), next(it)
    if has_qkv_bias:
        bq_ref, bkv_ref = next(it), next(it)
    wproj_ref, bproj_ref = next(it), next(it)
    g2_ref, be2_ref = next(it), next(it)
    wfc1_ref, bfc1_ref = next(it), next(it)
    wfc2_ref, bfc2_ref = next(it), next(it)
    o_ref, acc_ref = next(it), next(it)

    f32 = jnp.float32
    N, C = x_ref.shape[1], x_ref.shape[2]
    D = C // num_heads

    g1 = g1_ref[...].astype(f32)
    be1 = be1_ref[...].astype(f32)

    # Full-sequence LN1 (needed for k/v).  x block is VMEM-resident across the
    # query-tile axis (constant index map), so this is a pure-compute cost.
    x_full = x_ref[0].astype(f32)                     # (N, C)
    y_full = _layernorm(x_full, g1, be1, eps)
    y_full_mx = y_full.astype(mxu_dtype)

    if block_m == N:                                  # static branch
        x_tile, y_tile = x_full, y_full
    else:
        row0 = pl.multiple_of(pl.program_id(1) * block_m, block_m)
        x_tile = x_ref[0, pl.ds(row0, block_m), :].astype(f32)   # (TM, C)
        y_tile = _layernorm(x_tile, g1, be1, eps)
    y_tile_mx = y_tile.astype(mxu_dtype)

    mask = mask_ref[0].astype(f32)                    # (TM, N) additive mask

    # Per-head attention, projected head-by-head into a lane-dense (TM, C)
    # f32 accumulator (no concat, no lane-masked stores).
    acc_ref[...] = jnp.zeros_like(acc_ref)
    dn = (((1,), (1,)), ((), ()))                     # contract last dims, no k.T

    def head_body(h, carry):
        q_h = jnp.dot(y_tile_mx, wq_ref[h], preferred_element_type=f32)   # (TM, D)
        kv_h = jnp.dot(y_full_mx, wkv_ref[h], preferred_element_type=f32)  # (N, 2D)
        if has_qkv_bias:
            q_h = q_h + bq_ref[h].astype(f32)
            kv_h = kv_h + bkv_ref[h].astype(f32)
        q_h = (q_h * scale).astype(mxu_dtype)         # fold softmax scale into q
        k_h = kv_h[:, :D].astype(mxu_dtype)
        v_h = kv_h[:, D:].astype(mxu_dtype)

        s = lax.dot_general(q_h, k_h, dn, preferred_element_type=f32) + mask
        s = s - jnp.max(s, axis=-1, keepdims=True)
        p = jnp.exp(s)
        p = p * pl.reciprocal(jnp.sum(p, axis=-1, keepdims=True), approx=True)

        o_h = jnp.dot(p.astype(mxu_dtype), v_h, preferred_element_type=f32)  # (TM, D)
        acc_ref[...] += jnp.dot(o_h.astype(mxu_dtype), wproj_ref[h],
                                preferred_element_type=f32)                  # (TM, C)
        return carry

    lax.fori_loop(0, num_heads, head_body, 0)

    # ---- residual 1, LN2, MLP (exact GELU in f32), residual 2 ---------------
    x1 = x_tile + acc_ref[...] + bproj_ref[...].astype(f32)
    z = _layernorm(x1, g2_ref[...].astype(f32), be2_ref[...].astype(f32), eps)
    h1 = jnp.dot(z.astype(mxu_dtype), wfc1_ref[...], preferred_element_type=f32)
    h1 = _gelu_exact(h1 + bfc1_ref[...].astype(f32))
    h2 = jnp.dot(h1.astype(mxu_dtype), wfc2_ref[...], preferred_element_type=f32)
    o_ref[0] = (x1 + h2 + bfc2_ref[...].astype(f32)).astype(o_ref.dtype)


# ---------------------------------------------------------------------------
# Wrapper
# ---------------------------------------------------------------------------
def block_forward(x, attn_mask, params, num_heads, *, eps=1e-5,
                  qkv_bias=False, qk_scale=None, block_m=None,
                  mxu_dtype=jnp.bfloat16, mask_dtype=jnp.bfloat16):
    B, N, C = x.shape
    assert C % num_heads == 0
    D = C // num_heads
    Hd = params["w_fc1"].shape[1]
    scale = float(qk_scale) if qk_scale is not None else D ** (-0.5)

    if mxu_dtype is None:
        mxu_dtype = x.dtype

    # Query-tile size: full sequence when small, otherwise 256-token tiles.
    if block_m is None:
        block_m = N if N <= 256 else 256
    if N % block_m != 0 or block_m % 16 != 0:
        block_m = N   # TODO(synk): pad ragged N to a multiple of the tile size
    nt = N // block_m

    f32 = jnp.float32
    row = lambda v: v.reshape(1, -1).astype(f32)      # 1-D params -> (1,K) VMEM rows

    # Head-major weight layout (pure layout plumbing, done once per call):
    #   wq (H,C,D), wkv (H,C,2D), wproj (H,D,C)  -> leading-axis ref indexing
    wqkv = params["w_qkv"]
    wq = wqkv[:, 0 * C:1 * C].reshape(C, num_heads, D).transpose(1, 0, 2)
    wk = wqkv[:, 1 * C:2 * C].reshape(C, num_heads, D).transpose(1, 0, 2)
    wv = wqkv[:, 2 * C:3 * C].reshape(C, num_heads, D).transpose(1, 0, 2)
    wkv = jnp.concatenate([wk, wv], axis=-1)
    wproj = params["w_proj"].reshape(num_heads, D, C)

    weights = [row(params["g1"]), row(params["be1"]),
               wq.astype(mxu_dtype), wkv.astype(mxu_dtype)]
    if qkv_bias:
        bq = params["b_qkv"][0 * C:1 * C].reshape(num_heads, 1, D).astype(f32)
        bk = params["b_qkv"][1 * C:2 * C].reshape(num_heads, 1, D).astype(f32)
        bv = params["b_qkv"][2 * C:3 * C].reshape(num_heads, 1, D).astype(f32)
        weights += [bq, jnp.concatenate([bk, bv], axis=-1)]
    weights += [wproj.astype(mxu_dtype), row(params["b_proj"]),
                row(params["g2"]), row(params["be2"]),
                params["w_fc1"].astype(mxu_dtype), row(params["b_fc1"]),
                params["w_fc2"].astype(mxu_dtype), row(params["b_fc2"])]

    # Compress the (B,N,N) mask for HBM/VMEM traffic; expanded to f32 in-kernel.
    mask_in = attn_mask.astype(mask_dtype)

    # Explicit VMEM limit (default scoped limit is far below physical VMEM).
    try:
        vmem_cap = int(pltpu.get_tpu_info().vmem_capacity_bytes)
    except Exception:
        vmem_cap = 64 * 1024 * 1024
    vmem_limit = int(vmem_cap * 7 // 8)               # leave pipeline headroom

    # Advisory cost hint for the XLA scheduler.
    flops = int(B * (2 * N * C * C                    # q projection
                     + nt * 4 * N * C * C             # k/v projection per q-tile
                     + 4 * N * N * C                  # q@k^T and p@v
                     + 2 * N * C * C                  # per-head output projection
                     + 4 * N * C * Hd))               # MLP
    transcendentals = int(B * (num_heads * N * N + N * Hd + 2 * N))
    bytes_accessed = int(2 * x.size * x.dtype.itemsize
                         + mask_in.size * mask_in.dtype.itemsize
                         + sum(int(w.size) * w.dtype.itemsize for w in weights))
    cost = pl.CostEstimate(flops=flops, transcendentals=transcendentals,
                           bytes_accessed=bytes_accessed)

    kern = functools.partial(_block_kernel, num_heads=num_heads, scale=scale,
                             eps=eps, has_qkv_bias=qkv_bias, block_m=block_m,
                             mxu_dtype=mxu_dtype)

    in_specs = [
        pl.BlockSpec((1, N, C), lambda b, m: (b, 0, 0)),        # x: full seq, resident over m
        pl.BlockSpec((1, block_m, N), lambda b, m: (b, m, 0)),  # mask: per query tile
    ]
    for w in weights:                                            # VMEM-resident weights
        in_specs.append(
            pl.BlockSpec(w.shape, functools.partial(_const_index, ndim=w.ndim)))

    return pl.pallas_call(
        kern,
        out_shape=jax.ShapeDtypeStruct((B, N, C), x.dtype),
        grid=(B, nt),
        in_specs=in_specs,
        out_specs=pl.BlockSpec((1, block_m, C), lambda b, m: (b, m, 0)),
        scratch_shapes=[pltpu.VMEM((block_m, C), jnp.float32)],
        compiler_params=pltpu.CompilerParams(
            dimension_semantics=("parallel", "parallel"),
            vmem_limit_bytes=vmem_limit),
        cost_estimate=cost,
    )(x, mask_in, *weights)


# ---------------------------------------------------------------------------
# Pure-JAX reference (mirrors the PyTorch Block forward, eval mode).
# ---------------------------------------------------------------------------
def block_ref(x, attn_mask, params, num_heads, eps=1e-5):
    def ln(t, g, b):
        mu = t.mean(-1, keepdims=True)
        var = ((t - mu) ** 2).mean(-1, keepdims=True)
        return (t - mu) / jnp.sqrt(var + eps) * g + b

    B, N, C = x.shape
    D = C // num_heads
    scale = D ** (-0.5)

    y = ln(x, params["g1"], params["be1"])
    qkv = y @ params["w_qkv"] + params["b_qkv"]
    qkv = qkv.reshape(B, N, 3, num_heads, D).transpose(2, 0, 3, 1, 4)
    q, k, v = qkv[0], qkv[1], qkv[2]
    attn = jnp.einsum("bhqd,bhkd->bhqk", q, k) * scale + attn_mask[:, None]
    attn = jax.nn.softmax(attn, axis=-1)
    out = jnp.einsum("bhqk,bhkd->bhqd", attn, v)
    out = out.transpose(0, 2, 1, 3).reshape(B, N, C)
    out = out @ params["w_proj"] + params["b_proj"]
    x = x + out
    z = ln(x, params["g2"], params["be2"])
    h = jax.nn.gelu(z @ params["w_fc1"] + params["b_fc1"], approximate=False)
    h = h @ params["w_fc2"] + params["b_fc2"]
    return x + h


if __name__ == "__main__":
    key = jax.random.PRNGKey(0)
    B, N, C, H = 2, 8, 32, 4              # batch, tokens, dim, heads (head_dim = 8)
    Hd = 4 * C                            # mlp hidden (mlp_ratio = 4.0)

    ks = jax.random.split(key, 12)
    x = jax.random.normal(ks[0], (B, N, C), dtype=jnp.float32)

    # additive attention mask: 0 (keep) / -1e9 (masked)
    keep = jax.random.bernoulli(ks[1], p=0.8, shape=(B, N, N))
    attn_mask = jnp.where(keep, 0.0, -1e9).astype(jnp.float32)

    params = {
        "g1": 1.0 + 0.1 * jax.random.normal(ks[2], (C,), jnp.float32),
        "be1": 0.1 * jax.random.normal(ks[3], (C,), jnp.float32),
        "w_qkv": 0.05 * jax.random.normal(ks[4], (C, 3 * C), jnp.float32),
        "b_qkv": jnp.zeros((3 * C,), jnp.float32),          # qkv_bias=False
        "w_proj": 0.05 * jax.random.normal(ks[5], (C, C), jnp.float32),
        "b_proj": 0.05 * jax.random.normal(ks[6], (C,), jnp.float32),
        "g2": 1.0 + 0.1 * jax.random.normal(ks[7], (C,), jnp.float32),
        "be2": 0.1 * jax.random.normal(ks[8], (C,), jnp.float32),
        "w_fc1": 0.05 * jax.random.normal(ks[9], (C, Hd), jnp.float32),
        "b_fc1": 0.05 * jax.random.normal(ks[10], (Hd,), jnp.float32),
        "w_fc2": 0.05 * jax.random.normal(ks[11], (Hd, C), jnp.float32),
        "b_fc2": 0.05 * jax.random.normal(jax.random.PRNGKey(1), (C,), jnp.float32),
    }

    ref = block_ref(x, attn_mask, params, num_heads=H)

    # 1) f32-operand path: tight check (tolerance covers the EUP approximate
    #    reciprocal in the softmax denominator and the bf16 mask compression).
    out_f32 = block_forward(x, attn_mask, params, num_heads=H,
                            mxu_dtype=jnp.float32)
    out_f32 = jax.block_until_ready(out_f32)
    assert out_f32.shape == (B, N, C)
    assert jnp.allclose(out_f32, ref, atol=2e-3, rtol=2e-3), \
        "f32 kernel mismatch vs JAX reference"

    # 2) bf16-MXU path (default, the performance configuration): looser check,
    #    tolerance covers bf16 operand rounding with f32 accumulation.
    out_bf16 = block_forward(x, attn_mask, params, num_heads=H)
    out_bf16 = jax.block_until_ready(out_bf16)
    assert out_bf16.shape == (B, N, C)
    assert jnp.allclose(out_bf16, ref, atol=5e-2, rtol=5e-2), \
        "bf16 kernel mismatch vs JAX reference"

    print("KERNEL_OK")
</pallas_src>

<mosaic_0001>
module attributes {stable_mosaic.version = 11 : i64} {
  func.func @_block_kernel(%arg0: i32, %arg1: i32, %arg2: memref<1x8x32xf32, #tpu.memory_space<vmem>>, %arg3: memref<1x8x8xbf16, #tpu.memory_space<vmem>>, %arg4: memref<1x32xf32, #tpu.memory_space<vmem>>, %arg5: memref<1x32xf32, #tpu.memory_space<vmem>>, %arg6: memref<4x32x8xf32, #tpu.memory_space<vmem>>, %arg7: memref<4x32x16xf32, #tpu.memory_space<vmem>>, %arg8: memref<4x8x32xf32, #tpu.memory_space<vmem>>, %arg9: memref<1x32xf32, #tpu.memory_space<vmem>>, %arg10: memref<1x32xf32, #tpu.memory_space<vmem>>, %arg11: memref<1x32xf32, #tpu.memory_space<vmem>>, %arg12: memref<32x128xf32, #tpu.memory_space<vmem>>, %arg13: memref<1x128xf32, #tpu.memory_space<vmem>>, %arg14: memref<128x32xf32, #tpu.memory_space<vmem>>, %arg15: memref<1x32xf32, #tpu.memory_space<vmem>>, %arg16: memref<1x8x32xf32, #tpu.memory_space<vmem>>, %arg17: memref<8x32xf32, #tpu.memory_space<vmem>>) attributes {dimension_semantics = [#tpu.dimension_semantics<parallel>, #tpu.dimension_semantics<parallel>], iteration_bounds = array<i64: 2, 1>, scalar_prefetch = 0 : i64, scratch_operands = 1 : i64, tpu.core_type = #tpu.core_type<tc>, window_params = [{transform_indices = @transform_0, window_bounds = array<i64: 1, 8, 32>}, {transform_indices = @transform_1, window_bounds = array<i64: 1, 8, 8>}, {pipeline_mode = #tpu.pipeline_mode<synchronous>, transform_indices = @transform_2, window_bounds = array<i64: 1, 32>}, {pipeline_mode = #tpu.pipeline_mode<synchronous>, transform_indices = @transform_3, window_bounds = array<i64: 1, 32>}, {pipeline_mode = #tpu.pipeline_mode<synchronous>, transform_indices = @transform_4, window_bounds = array<i64: 4, 32, 8>}, {pipeline_mode = #tpu.pipeline_mode<synchronous>, transform_indices = @transform_5, window_bounds = array<i64: 4, 32, 16>}, {pipeline_mode = #tpu.pipeline_mode<synchronous>, transform_indices = @transform_6, window_bounds = array<i64: 4, 8, 32>}, {pipeline_mode = #tpu.pipeline_mode<synchronous>, transform_indices = @transform_7, window_bounds = array<i64: 1, 32>}, {pipeline_mode = #tpu.pipeline_mode<synchronous>, transform_indices = @transform_8, window_bounds = array<i64: 1, 32>}, {pipeline_mode = #tpu.pipeline_mode<synchronous>, transform_indices = @transform_9, window_bounds = array<i64: 1, 32>}, {pipeline_mode = #tpu.pipeline_mode<synchronous>, transform_indices = @transform_10, window_bounds = array<i64: 32, 128>}, {pipeline_mode = #tpu.pipeline_mode<synchronous>, transform_indices = @transform_11, window_bounds = array<i64: 1, 128>}, {pipeline_mode = #tpu.pipeline_mode<synchronous>, transform_indices = @transform_12, window_bounds = array<i64: 128, 32>}, {pipeline_mode = #tpu.pipeline_mode<synchronous>, transform_indices = @transform_13, window_bounds = array<i64: 1, 32>}, {transform_indices = @transform_14, window_bounds = array<i64: 1, 8, 32>}]} {
    %c0 = arith.constant 0 : index
    %c0_0 = arith.constant 0 : index
    %0 = vector.load %arg4[%c0, %c0_0] : memref<1x32xf32, #tpu.memory_space<vmem>>, vector<1x32xf32>
    %c0_1 = arith.constant 0 : index
    %c0_2 = arith.constant 0 : index
    %1 = vector.load %arg5[%c0_1, %c0_2] : memref<1x32xf32, #tpu.memory_space<vmem>>, vector<1x32xf32>
    %c0_3 = arith.constant 0 : index
    %c0_4 = arith.constant 0 : index
    %c0_5 = arith.constant 0 : index
    %2 = vector.load %arg2[%c0_3, %c0_4, %c0_5] : memref<1x8x32xf32, #tpu.memory_space<vmem>>, vector<1x8x32xf32>
    %3 = vector.shape_cast %2 : vector<1x8x32xf32> to vector<8x32xf32>
    %cst = arith.constant dense<0.000000e+00> : vector<8xf32>
    %4 = vector.multi_reduction <add>, %3, %cst [1] : vector<8x32xf32> to vector<8xf32>
    %5 = vector.shape_cast %4 : vector<8xf32> to vector<8x1xf32>
    %cst_6 = arith.constant 3.200000e+01 : f32
    %6 = vector.broadcast %cst_6 : f32 to vector<8x1xf32>
    %7 = arith.divf %5, %6 : vector<8x1xf32>
    %8 = vector.broadcast %7 : vector<8x1xf32> to vector<8x32xf32>
    %9 = arith.subf %3, %8 : vector<8x32xf32>
    %10 = arith.mulf %9, %9 : vector<8x32xf32>
    %cst_7 = arith.constant dense<0.000000e+00> : vector<8xf32>
    %11 = vector.multi_reduction <add>, %10, %cst_7 [1] : vector<8x32xf32> to vector<8xf32>
    %12 = vector.shape_cast %11 : vector<8xf32> to vector<8x1xf32>
    %cst_8 = arith.constant 3.200000e+01 : f32
    %13 = vector.broadcast %cst_8 : f32 to vector<8x1xf32>
    %14 = arith.divf %12, %13 : vector<8x1xf32>
    %cst_9 = arith.constant 9.99999974E-6 : f32
    %15 = vector.broadcast %cst_9 : f32 to vector<8x1xf32>
    %16 = arith.addf %14, %15 : vector<8x1xf32>
    %17 = math.rsqrt %16 : vector<8x1xf32>
    %18 = vector.broadcast %17 : vector<8x1xf32> to vector<8x32xf32>
    %19 = arith.mulf %9, %18 : vector<8x32xf32>
    %20 = vector.broadcast %0 : vector<1x32xf32> to vector<8x32xf32>
    %21 = arith.mulf %19, %20 : vector<8x32xf32>
    %22 = vector.broadcast %1 : vector<1x32xf32> to vector<8x32xf32>
    %23 = arith.addf %21, %22 : vector<8x32xf32>
    %c0_10 = arith.constant 0 : index
    %c0_11 = arith.constant 0 : index
    %c0_12 = arith.constant 0 : index
    %24 = vector.load %arg3[%c0_10, %c0_11, %c0_12] : memref<1x8x8xbf16, #tpu.memory_space<vmem>>, vector<1x8x8xbf16>
    %25 = vector.shape_cast %24 : vector<1x8x8xbf16> to vector<8x8xbf16>
    %26 = arith.extf %25 : vector<8x8xbf16> to vector<8x8xf32>
    %cst_13 = arith.constant 0.000000e+00 : f32
    %27 = vector.broadcast %cst_13 : f32 to vector<8x32xf32>
    %c0_14 = arith.constant 0 : index
    %c0_15 = arith.constant 0 : index
    %28 = vector.load %arg17[%c0_14, %c0_15] : memref<8x32xf32, #tpu.memory_space<vmem>>, vector<8x32xf32>
    tpu.vector_store %arg17[%c0_14, %c0_15], %27 {strides = array<i32>} : memref<8x32xf32, #tpu.memory_space<vmem>>, vector<8x32xf32>,
    %c0_i32 = arith.constant 0 : i32
    %c4_i32 = arith.constant 4 : i32
    %29 = arith.addi %c0_i32, %c4_i32 : i32
    %c1_i32 = arith.constant 1 : i32
    scf.for %arg18 = %c0_i32 to %29 step %c1_i32  : i32 {
      %111 = arith.index_cast %arg18 : i32 to index
      %c0_58 = arith.constant 0 : index
      %c0_59 = arith.constant 0 : index
      %112 = vector.load %arg6[%111, %c0_58, %c0_59] : memref<4x32x8xf32, #tpu.memory_space<vmem>>, vector<1x32x8xf32>
      %113 = vector.shape_cast %112 : vector<1x32x8xf32> to vector<32x8xf32>
      %cst_60 = arith.constant dense<0.000000e+00> : vector<8x8xf32>
      %114 = tpu.matmul %23, %113, %cst_60 {dimension_numbers = #tpu.dot_dimension_numbers<[1], [0], [0], [1], [0, 0, 1, 1], [], []>} : vector<8x32xf32>, vector<32x8xf32>, vector<8x8xf32> -> vector<8x8xf32>
      %115 = arith.index_cast %arg18 : i32 to index
      %c0_61 = arith.constant 0 : index
      %c0_62 = arith.constant 0 : index
      %116 = vector.load %arg7[%115, %c0_61, %c0_62] : memref<4x32x16xf32, #tpu.memory_space<vmem>>, vector<1x32x16xf32>
      %117 = vector.shape_cast %116 : vector<1x32x16xf32> to vector<32x16xf32>
      %cst_63 = arith.constant dense<0.000000e+00> : vector<8x16xf32>
      %118 = tpu.matmul %23, %117, %cst_63 {dimension_numbers = #tpu.dot_dimension_numbers<[1], [0], [0], [1], [0, 0, 1, 1], [], []>} : vector<8x32xf32>, vector<32x16xf32>, vector<8x16xf32> -> vector<8x16xf32>
      %cst_64 = arith.constant 0.353553385 : f32
      %119 = vector.broadcast %cst_64 : f32 to vector<8x8xf32>
      %120 = arith.mulf %114, %119 : vector<8x8xf32>
      %121 = vector.extract_strided_slice %118 {offsets = [0, 0], sizes = [8, 8], strides = [1, 1]} : vector<8x16xf32> to vector<8x8xf32>
      %122 = vector.extract_strided_slice %118 {offsets = [0, 8], sizes = [8, 8], strides = [1, 1]} : vector<8x16xf32> to vector<8x8xf32>
      %cst_65 = arith.constant dense<0.000000e+00> : vector<8x8xf32>
      %123 = tpu.matmul %120, %121, %cst_65 {dimension_numbers = #tpu.dot_dimension_numbers<[1], [1], [0], [0], [0, 0, 1, 0], [], []>} : vector<8x8xf32>, vector<8x8xf32>, vector<8x8xf32> -> vector<8x8xf32>
      %124 = arith.addf %123, %26 : vector<8x8xf32>
      %cst_66 = arith.constant dense<0xFF800000> : vector<8xf32>
      %125 = vector.multi_reduction <maximumf>, %124, %cst_66 [1] : vector<8x8xf32> to vector<8xf32>
      %126 = vector.shape_cast %125 : vector<8xf32> to vector<8x1xf32>
      %127 = vector.broadcast %126 : vector<8x1xf32> to vector<8x8xf32>
      %128 = arith.subf %124, %127 : vector<8x8xf32>
      %129 = math.exp %128 : vector<8x8xf32>
      %cst_67 = arith.constant dense<0.000000e+00> : vector<8xf32>
      %130 = vector.multi_reduction <add>, %129, %cst_67 [1] : vector<8x8xf32> to vector<8xf32>
      %131 = vector.shape_cast %130 : vector<8xf32> to vector<8x1xf32>
      %132 = tpu.reciprocal %131 {approx = true} : vector<8x1xf32> -> vector<8x1xf32>
      %133 = vector.broadcast %132 : vector<8x1xf32> to vector<8x8xf32>
      %134 = arith.mulf %129, %133 : vector<8x8xf32>
      %cst_68 = arith.constant dense<0.000000e+00> : vector<8x8xf32>
      %135 = tpu.matmul %134, %122, %cst_68 {dimension_numbers = #tpu.dot_dimension_numbers<[1], [0], [0], [1], [0, 0, 1, 1], [], []>} : vector<8x8xf32>, vector<8x8xf32>, vector<8x8xf32> -> vector<8x8xf32>
      %c0_69 = arith.constant 0 : index
      %c0_70 = arith.constant 0 : index
      %136 = vector.load %arg17[%c0_69, %c0_70] : memref<8x32xf32, #tpu.memory_space<vmem>>, vector<8x32xf32>
      %137 = arith.index_cast %arg18 : i32 to index
      %c0_71 = arith.constant 0 : index
      %c0_72 = arith.constant 0 : index
      %138 = vector.load %arg8[%137, %c0_71, %c0_72] : memref<4x8x32xf32, #tpu.memory_space<vmem>>, vector<1x8x32xf32>
      %139 = vector.shape_cast %138 : vector<1x8x32xf32> to vector<8x32xf32>
      %cst_73 = arith.constant dense<0.000000e+00> : vector<8x32xf32>
      %140 = tpu.matmul %135, %139, %cst_73 {dimension_numbers = #tpu.dot_dimension_numbers<[1], [0], [0], [1], [0, 0, 1, 1], [], []>} : vector<8x8xf32>, vector<8x32xf32>, vector<8x32xf32> -> vector<8x32xf32>
      %141 = arith.addf %136, %140 : vector<8x32xf32>
      %c0_74 = arith.constant 0 : index
      %c0_75 = arith.constant 0 : index
      %142 = vector.load %arg17[%c0_74, %c0_75] : memref<8x32xf32, #tpu.memory_space<vmem>>, vector<8x32xf32>
      tpu.vector_store %arg17[%c0_74, %c0_75], %141 {strides = array<i32>} : memref<8x32xf32, #tpu.memory_space<vmem>>, vector<8x32xf32>,
    }
    %c4_i32_16 = arith.constant 4 : i32
    %c0_17 = arith.constant 0 : index
    %c0_18 = arith.constant 0 : index
    %30 = vector.load %arg17[%c0_17, %c0_18] : memref<8x32xf32, #tpu.memory_space<vmem>>, vector<8x32xf32>
    %31 = arith.addf %3, %30 : vector<8x32xf32>
    %c0_19 = arith.constant 0 : index
    %c0_20 = arith.constant 0 : index
    %32 = vector.load %arg9[%c0_19, %c0_20] : memref<1x32xf32, #tpu.memory_space<vmem>>, vector<1x32xf32>
    %33 = vector.broadcast %32 : vector<1x32xf32> to vector<8x32xf32>
    %34 = arith.addf %31, %33 : vector<8x32xf32>
    %c0_21 = arith.constant 0 : index
    %c0_22 = arith.constant 0 : index
    %35 = vector.load %arg10[%c0_21, %c0_22] : memref<1x32xf32, #tpu.memory_space<vmem>>, vector<1x32xf32>
    %c0_23 = arith.constant 0 : index
    %c0_24 = arith.constant 0 : index
    %36 = vector.load %arg11[%c0_23, %c0_24] : memref<1x32xf32, #tpu.memory_space<vmem>>, vector<1x32xf32>
    %cst_25 = arith.constant dense<0.000000e+00> : vector<8xf32>
    %37 = vector.multi_reduction <add>, %34, %cst_25 [1] : vector<8x32xf32> to vector<8xf32>
    %38 = vector.shape_cast %37 : vector<8xf32> to vector<8x1xf32>
    %cst_26 = arith.constant 3.200000e+01 : f32
    %39 = vector.broadcast %cst_26 : f32 to vector<8x1xf32>
    %40 = arith.divf %38, %39 : vector<8x1xf32>
    %41 = vector.broadcast %40 : vector<8x1xf32> to vector<8x32xf32>
    %42 = arith.subf %34, %41 : vector<8x32xf32>
    %43 = arith.mulf %42, %42 : vector<8x32xf32>
    %cst_27 = arith.constant dense<0.000000e+00> : vector<8xf32>
    %44 = vector.multi_reduction <add>, %43, %cst_27 [1] : vector<8x32xf32> to vector<8xf32>
    %45 = vector.shape_cast %44 : vector<8xf32> to vector<8x1xf32>
    %cst_28 = arith.constant 3.200000e+01 : f32
    %46 = vector.broadcast %cst_28 : f32 to vector<8x1xf32>
    %47 = arith.divf %45, %46 : vector<8x1xf32>
    %cst_29 = arith.constant 9.99999974E-6 : f32
    %48 = vector.broadcast %cst_29 : f32 to vector<8x1xf32>
    %49 = arith.addf %47, %48 : vector<8x1xf32>
    %50 = math.rsqrt %49 : vector<8x1xf32>
    %51 = vector.broadcast %50 : vector<8x1xf32> to vector<8x32xf32>
    %52 = arith.mulf %42, %51 : vector<8x32xf32>
    %53 = vector.broadcast %35 : vector<1x32xf32> to vector<8x32xf32>
    %54 = arith.mulf %52, %53 : vector<8x32xf32>
    %55 = vector.broadcast %36 : vector<1x32xf32> to vector<8x32xf32>
    %56 = arith.addf %54, %55 : vector<8x32xf32>
    %c0_30 = arith.constant 0 : index
    %c0_31 = arith.constant 0 : index
    %57 = vector.load %arg12[%c0_30, %c0_31] : memref<32x128xf32, #tpu.memory_space<vmem>>, vector<32x128xf32>
    %cst_32 = arith.constant dense<0.000000e+00> : vector<8x128xf32>
    %58 = tpu.matmul %56, %57, %cst_32 {dimension_numbers = #tpu.dot_dimension_numbers<[1], [0], [0], [1], [0, 0, 1, 1], [], []>} : vector<8x32xf32>, vector<32x128xf32>, vector<8x128xf32> -> vector<8x128xf32>
    %c0_33 = arith.constant 0 : index
    %c0_34 = arith.constant 0 : index
    %59 = vector.load %arg13[%c0_33, %c0_34] : memref<1x128xf32, #tpu.memory_space<vmem>>, vector<1x128xf32>
    %60 = vector.broadcast %59 : vector<1x128xf32> to vector<8x128xf32>
    %61 = arith.addf %58, %60 : vector<8x128xf32>
    %cst_35 = arith.constant 5.000000e-01 : f32
    %62 = vector.broadcast %cst_35 : f32 to vector<8x128xf32>
    %63 = arith.mulf %62, %61 : vector<8x128xf32>
    %cst_36 = arith.constant 0.707106769 : f32
    %64 = vector.broadcast %cst_36 : f32 to vector<8x128xf32>
    %65 = arith.mulf %61, %64 : vector<8x128xf32>
    %66 = math.absf %65 : vector<8x128xf32>
    %cst_37 = arith.constant 0.327591091 : f32
    %67 = vector.broadcast %cst_37 : f32 to vector<8x128xf32>
    %68 = arith.mulf %67, %66 : vector<8x128xf32>
    %cst_38 = arith.constant 1.000000e+00 : f32
    %69 = vector.broadcast %cst_38 : f32 to vector<8x128xf32>
    %70 = arith.addf %69, %68 : vector<8x128xf32>
    %cst_39 = arith.constant 1.000000e+00 : f32
    %71 = vector.broadcast %cst_39 : f32 to vector<8x128xf32>
    %72 = arith.divf %71, %70 : vector<8x128xf32>
    %cst_40 = arith.constant 1.06140542 : f32
    %73 = vector.broadcast %cst_40 : f32 to vector<8x128xf32>
    %74 = arith.mulf %73, %72 : vector<8x128xf32>
    %cst_41 = arith.constant -1.45315206 : f32
    %75 = vector.broadcast %cst_41 : f32 to vector<8x128xf32>
    %76 = arith.addf %74, %75 : vector<8x128xf32>
    %77 = arith.mulf %76, %72 : vector<8x128xf32>
    %cst_42 = arith.constant 1.42141378 : f32
    %78 = vector.broadcast %cst_42 : f32 to vector<8x128xf32>
    %79 = arith.addf %77, %78 : vector<8x128xf32>
    %80 = arith.mulf %79, %72 : vector<8x128xf32>
    %cst_43 = arith.constant -0.284496725 : f32
    %81 = vector.broadcast %cst_43 : f32 to vector<8x128xf32>
    %82 = arith.addf %80, %81 : vector<8x128xf32>
    %83 = arith.mulf %82, %72 : vector<8x128xf32>
    %cst_44 = arith.constant 0.254829586 : f32
    %84 = vector.broadcast %cst_44 : f32 to vector<8x128xf32>
    %85 = arith.addf %83, %84 : vector<8x128xf32>
    %86 = arith.mulf %85, %72 : vector<8x128xf32>
    %cst_45 = arith.constant 0.000000e+00 : f32
    %87 = vector.broadcast %cst_45 : f32 to vector<8x128xf32>
    %88 = arith.subf %87, %66 : vector<8x128xf32>
    %89 = arith.mulf %88, %66 : vector<8x128xf32>
    %90 = math.exp %89 : vector<8x128xf32>
    %91 = arith.mulf %86, %90 : vector<8x128xf32>
    %cst_46 = arith.constant 1.000000e+00 : f32
    %92 = vector.broadcast %cst_46 : f32 to vector<8x128xf32>
    %93 = arith.subf %92, %91 : vector<8x128xf32>
    %cst_47 = arith.constant 0.000000e+00 : f32
    %94 = vector.broadcast %cst_47 : f32 to vector<8x128xf32>
    %95 = arith.cmpf olt, %65, %94 : vector<8x128xf32>
    %cst_48 = arith.constant 0.000000e+00 : f32
    %96 = vector.broadcast %cst_48 : f32 to vector<8x128xf32>
    %97 = arith.subf %96, %93 : vector<8x128xf32>
    %98 = arith.select %95, %97, %93 : vector<8x128xi1>, vector<8x128xf32>
    %cst_49 = arith.constant 1.000000e+00 : f32
    %99 = vector.broadcast %cst_49 : f32 to vector<8x128xf32>
    %100 = arith.addf %99, %98 : vector<8x128xf32>
    %101 = arith.mulf %63, %100 : vector<8x128xf32>
    %c0_50 = arith.constant 0 : index
    %c0_51 = arith.constant 0 : index
    %102 = vector.load %arg14[%c0_50, %c0_51] : memref<128x32xf32, #tpu.memory_space<vmem>>, vector<128x32xf32>
    %cst_52 = arith.constant dense<0.000000e+00> : vector<8x32xf32>
    %103 = tpu.matmul %101, %102, %cst_52 {dimension_numbers = #tpu.dot_dimension_numbers<[1], [0], [0], [1], [0, 0, 1, 1], [], []>} : vector<8x128xf32>, vector<128x32xf32>, vector<8x32xf32> -> vector<8x32xf32>
    %104 = arith.addf %34, %103 : vector<8x32xf32>
    %c0_53 = arith.constant 0 : index
    %c0_54 = arith.constant 0 : index
    %105 = vector.load %arg15[%c0_53, %c0_54] : memref<1x32xf32, #tpu.memory_space<vmem>>, vector<1x32xf32>
    %106 = vector.broadcast %105 : vector<1x32xf32> to vector<8x32xf32>
    %107 = arith.addf %104, %106 : vector<8x32xf32>
    %c0_55 = arith.constant 0 : index
    %c0_56 = arith.constant 0 : index
    %c0_57 = arith.constant 0 : index
    %108 = vector.load %arg16[%c0_55, %c0_56, %c0_57] : memref<1x8x32xf32, #tpu.memory_space<vmem>>, vector<1x8x32xf32>
    %109 = vector.shape_cast %108 : vector<1x8x32xf32> to vector<8x32xf32>
    %110 = vector.shape_cast %107 : vector<8x32xf32> to vector<1x8x32xf32>
    tpu.vector_store %arg16[%c0_55, %c0_56, %c0_57], %110 {strides = array<i32>} : memref<1x8x32xf32, #tpu.memory_space<vmem>>, vector<1x8x32xf32>,
    return
  }
  func.func @transform_0(%arg0: i32, %arg1: i32) -> (i32, i32, i32) {
    %c0_i32 = arith.constant 0 : i32
    %c0_i32_0 = arith.constant 0 : i32
    %c0_i32_1 = arith.constant 0 : i32
    return %arg0, %c0_i32, %c0_i32_0 : i32, i32, i32
  }
  func.func @transform_1(%arg0: i32, %arg1: i32) -> (i32, i32, i32) {
    %c0_i32 = arith.constant 0 : i32
    %c0_i32_0 = arith.constant 0 : i32
    return %arg0, %arg1, %c0_i32 : i32, i32, i32
  }
  func.func @transform_2(%arg0: i32, %arg1: i32) -> (i32, i32) {
    %c0_i32 = arith.constant 0 : i32
    %c0_i32_0 = arith.constant 0 : i32
    %c0_i32_1 = arith.constant 0 : i32
    return %c0_i32, %c0_i32_0 : i32, i32
  }
  func.func @transform_3(%arg0: i32, %arg1: i32) -> (i32, i32) {
    %c0_i32 = arith.constant 0 : i32
    %c0_i32_0 = arith.constant 0 : i32
    %c0_i32_1 = arith.constant 0 : i32
    return %c0_i32, %c0_i32_0 : i32, i32
  }
  func.func @transform_4(%arg0: i32, %arg1: i32) -> (i32, i32, i32) {
    %c0_i32 = arith.constant 0 : i32
    %c0_i32_0 = arith.constant 0 : i32
    %c0_i32_1 = arith.constant 0 : i32
    %c0_i32_2 = arith.constant 0 : i32
    return %c0_i32, %c0_i32_0, %c0_i32_1 : i32, i32, i32
  }
  func.func @transform_5(%arg0: i32, %arg1: i32) -> (i32, i32, i32) {
    %c0_i32 = arith.constant 0 : i32
    %c0_i32_0 = arith.constant 0 : i32
    %c0_i32_1 = arith.constant 0 : i32
    %c0_i32_2 = arith.constant 0 : i32
    return %c0_i32, %c0_i32_0, %c0_i32_1 : i32, i32, i32
  }
  func.func @transform_6(%arg0: i32, %arg1: i32) -> (i32, i32, i32) {
    %c0_i32 = arith.constant 0 : i32
    %c0_i32_0 = arith.constant 0 : i32
    %c0_i32_1 = arith.constant 0 : i32
    %c0_i32_2 = arith.constant 0 : i32
    return %c0_i32, %c0_i32_0, %c0_i32_1 : i32, i32, i32
  }
  func.func @transform_7(%arg0: i32, %arg1: i32) -> (i32, i32) {
    %c0_i32 = arith.constant 0 : i32
    %c0_i32_0 = arith.constant 0 : i32
    %c0_i32_1 = arith.constant 0 : i32
    return %c0_i32, %c0_i32_0 : i32, i32
  }
  func.func @transform_8(%arg0: i32, %arg1: i32) -> (i32, i32) {
    %c0_i32 = arith.constant 0 : i32
    %c0_i32_0 = arith.constant 0 : i32
    %c0_i32_1 = arith.constant 0 : i32
    return %c0_i32, %c0_i32_0 : i32, i32
  }
  func.func @transform_9(%arg0: i32, %arg1: i32) -> (i32, i32) {
    %c0_i32 = arith.constant 0 : i32
    %c0_i32_0 = arith.constant 0 : i32
    %c0_i32_1 = arith.constant 0 : i32
    return %c0_i32, %c0_i32_0 : i32, i32
  }
  func.func @transform_10(%arg0: i32, %arg1: i32) -> (i32, i32) {
    %c0_i32 = arith.constant 0 : i32
    %c0_i32_0 = arith.constant 0 : i32
    %c0_i32_1 = arith.constant 0 : i32
    return %c0_i32, %c0_i32_0 : i32, i32
  }
  func.func @transform_11(%arg0: i32, %arg1: i32) -> (i32, i32) {
    %c0_i32 = arith.constant 0 : i32
    %c0_i32_0 = arith.constant 0 : i32
    %c0_i32_1 = arith.constant 0 : i32
    return %c0_i32, %c0_i32_0 : i32, i32
  }
  func.func @transform_12(%arg0: i32, %arg1: i32) -> (i32, i32) {
    %c0_i32 = arith.constant 0 : i32
    %c0_i32_0 = arith.constant 0 : i32
    %c0_i32_1 = arith.constant 0 : i32
    return %c0_i32, %c0_i32_0 : i32, i32
  }
  func.func @transform_13(%arg0: i32, %arg1: i32) -> (i32, i32) {
    %c0_i32 = arith.constant 0 : i32
    %c0_i32_0 = arith.constant 0 : i32
    %c0_i32_1 = arith.constant 0 : i32
    return %c0_i32, %c0_i32_0 : i32, i32
  }
  func.func @transform_14(%arg0: i32, %arg1: i32) -> (i32, i32, i32) {
    %c0_i32 = arith.constant 0 : i32
    %c0_i32_0 = arith.constant 0 : i32
    return %arg0, %arg1, %c0_i32 : i32, i32, i32
  }
}

</mosaic_0001>

<bundles_post_ra>
// kernel: tpu_custom_call.1
= control target key start
LH: loop header
LB: loop body
LE: loop exit
PB: predicated region body
PF: predicated region fallthrough
CT: control target
= control target key end

     0   :  { %s2012_s0 = inlined_call_operand.vmem [shape: f32[2,8,32], index: 0, kind: input, shape index: {}]   ;;  %s2013_s1 = inlined_call_operand.vmem [shape: bf16[2,8,8], index: 1, kind: input, shape index: {}]   ;;  %s2014_s2 = inlined_call_operand.vmem [shape: f32[1,32], index: 2, kind: input, shape index: {}]   ;;  %s2015_s3 = inlined_call_operand.vmem [shape: f32[1,32], index: 3, kind: input, shape index: {}]   ;;  %s2016_s4 = inlined_call_operand.vmem [shape: f32[4,32,8], index: 4, kind: input, shape index: {}]   ;;  %s2017_s5 = inlined_call_operand.vmem [shape: f32[4,32,16], index: 5, kind: input, shape index: {}]   ;;  %s2018_s6 = inlined_call_operand.vmem [shape: f32[4,8,32], index: 6, kind: input, shape index: {}]   ;;  %s2019_s7 = inlined_call_operand.vmem [shape: f32[1,32], index: 7, kind: input, shape index: {}]   ;;  %s2020_s8 = inlined_call_operand.vmem [shape: f32[1,32], index: 8, kind: input, shape index: {}]   ;;  %s2021_s9 = inlined_call_operand.vmem [shape: f32[1,32], index: 9, kind: input, shape index: {}]   ;;  %s2022_s10 = inlined_call_operand.vmem [shape: f32[32,128], index: 10, kind: input, shape index: {}]   ;;  %s2023_s11 = inlined_call_operand.vmem [shape: f32[1,128], index: 11, kind: input, shape index: {}]   ;;  %s2024_s12 = inlined_call_operand.vmem [shape: f32[128,32], index: 12, kind: input, shape index: {}]   ;;  %s2025_s13 = inlined_call_operand.vmem [shape: f32[1,32], index: 13, kind: input, shape index: {}]   ;;  %s2026_s14 = inlined_call_operand.hbm [shape: f32[2,8,32], index: 14, kind: output, shape index: {}]  }
   0x1   :  { %2030 = sst [smem:[#allocation9_spill]] %s2012_s0 }
   0x2   :  { %2031 = sst [smem:[#allocation10_spill]] %s2013_s1 }
   0x3   :  { %19 = vsyncpa [#allocation4], 0 }
   0x4   :  { %21 = vsyncpa [#allocation4 + $0x1], 0  ;;  %s1743_s29 = smov 0   ;;  %s1745_s30 = smov 0  }
   0x5   :  { %s1747_s15 = smov 0   ;;  %s1749_s16 = smov 0  }
   0x6   :  { %s1751_s17 = smov 0   ;;  %s1753_s18 = smov 0  }
   0x7 LB: > { %2032 = sst [smem:[#allocation6_spill]] %s1650_s17  ;;  %s1299_s19 = sadd.s32 4294967295, %s1654_s18   ;;  %s1654_s18 = sphi %s1753_s18, %s27_s18   ;;  %s1650_s17 = sphi %s1751_s17, %s2044_s17   ;;  %s1646_s16 = sphi %s1749_s16, %s2043_s16   ;;  %s1642_s15 = sphi %s1747_s15, %s2047_s15   ;;  %s1638_s30 = sphi %s1745_s30, %s2046_s30   ;;  %s1634_s29 = sphi %s1743_s29, %s2045_s29  }
   0x8   : > { %s1300_s20 = sadd.s32 4294967294, %s1654_s18   ;;  %s39_s21 = sadd.s32 1, %s1650_s17 }
   0x9   : > { %s354_s22 = sadd.s32 1, %s1642_s15  ;;  %p41_p0 = scmp.ge.s32.totalorder %s39_s21, 2 }
   0xa   : > { %p364_p1 = scmp.ne.s32.totalorder %s1642_s15, %s1638_s30  ;;  %p365_p2 = scmp.eq.s32.totalorder %s1299_s19, 1 }
   0xb   : > { %p370_p3 = scmp.ne.s32.totalorder %s1638_s30, %s1634_s29  ;;  %s2049_s21 = smov (%p41_p0, %s39_s21), 0 }
   0xc   : > { %2033 = sst [smem:[#allocation7_spill]] %s2049_s21  ;;  %p1783_p4 = por %p365_p2, %p364_p1 }
   0xd   : > { %p371_p5 = scmp.eq.s32.totalorder %s1300_s20, 1  ;;  %s349_s24 = ssub.s32 %s1650_s17, %s2049_s21 }
   0xe   : > { %p1303_p6 = scmp.ge.s32.totalorder %s1654_s18, 1  ;;  %p352_p7 = scmp.eq.s32.totalorder %s349_s24, 0 }
   0xf   : > { %p1790_p8 = por %p371_p5, %p370_p3  ;;  %p442_p9 = scmp.lt.s32.totalorder %s1654_s18, 3 }
  0x10   : > { %s1796_s26 = scalar_select %p352_p7, %s1642_s15, %s354_s22  }
  0x11   : > { %p443_p10 = pnand %p1303_p6, %p442_p9 }
  0x12   : > { %2036 = sst [smem:[#allocation8_spill]] %s1796_s26  ;;  %p494_p11 = scmp.lt.s32.totalorder (!%p443_p10), %s1646_s16, 1  ;;  %vm508_vm0 = vcmask (!%p443_p10), 261120   ;;  %v1660_v0 = vmov (!%p443_p10), 0.0   ;;  %v1307_v14 = vld [vmem:[%s2014_s2] ss:$0 sm:$0xff] (!%p443_p10) }
  0x13   : > { %446 = sbr.rel (%p443_p10) target bundleno = 2341 (0x925), region = 76  ;;  %539 = vst.msk [vmem:[#allocation2] sm:$0xff] (!%p443_p10), %vm508_vm0, %v1660_v0  ;;  %s2037_s0 = sld [smem:[#allocation9_spill]] (!%p443_p10)  ;;  %v1308_v16 = vld [vmem:[%s2015_s3] ss:$0 sm:$0xff] (!%p443_p10) }
  0x14   : > { %s2038_s1 = sld [smem:[#allocation10_spill]] (!%p443_p10)  ;;  %s2029_s17 = sand.u32 (!%p443_p10), 1, %s1638_s30  }
  0x15   : > { %s1820_s21 = sshll.u32 (!%p443_p10), %s2029_s17, 3  ;;  %s1831_s24 = smov (!%p443_p10), 0  }
  0x1a   : > { %s495_s27 = scalar_select %p494_p11, %s1646_s16, 1 }
  0x1c   : > { %s1305_s28 = sshll.u32 %s495_s27, 3  ;;  %s1306_s19 = sshll.u32 %s495_s27, 2 }
  0x1d   : > { %s497_s22 = scalar_lea.vmem %s2037_s0, %s1305_s28  ;;  %s504_s26 = scalar_lea.vmem %s2038_s1, %s1306_s19 }
  0x1e   : > { %v1808_v1 = vld [vmem:[%s497_s22] sm:$0xff] }
  0x1f   : > { %v1810_v2 = vld [vmem:[%s504_s26] sm:$0xf]  ;;  %v509_v3 = vsel %vm508_vm0, %v1808_v1, 0.0 }
  0x20   : > { %v538_v4 = vunpack.c.l.bf16 %v1810_v2  ;;  %510 = vadd.xlane.f32.xlu0 %v509_v3 }
  0xad   : > { %v511_v5 = vpop.xlane.xlu0 %510 }
  0xae   : > { %v513_v6 = vmul.f32 0.03125, %v511_v5 }
  0xb0   : > { %v514_v7 = vsub.f32 %v1808_v1, %v513_v6 }
  0xb2   : > { %v515_v8 = vmul.f32 %v514_v7, %v514_v7 }
  0xb4   : > { %v516_v9 = vsel %vm508_vm0, %v515_v8, 0.0 }
  0xb5   : > { %517 = vadd.xlane.f32.xlu0 %v516_v9 }
 0x142   : > { %v518_v10 = vpop.xlane.xlu0 %517 }
 0x143   : > { %v519_v11 = vmul.f32 0.03125, %v518_v10 }
 0x145   : > { %v520_v12 = vadd.f32 1e-05, %v519_v11 }
 0x147   : > { %1560 = vrsqrt.f32 %v520_v12 }
 0x151   : > { %v1561_v13 = vpop.eup %1560 }
 0x152   : > { %v522_v15 = vmul.f32 %v1561_v13, %v514_v7 }
 0x154   : > { %v529_v17 = vmul.f32 %v1307_v14, %v522_v15 }
 0x156   : > { %v1828_v18 = vadd.f32 %v1308_v16, %v529_v17 }
 0x157 LB: >> { %v1661_v19 = vmov 0.0|0.0   ;;  %s1309_s22 = sshll.u32 %s1658_s24, 5  ;;  %vm1662_vm1 = vmmov 0   ;;  %v1663_v20 = vmov 0.0   ;;  %vm701_vm2 = vcmask 64512   ;;  %s1664_s17 = smov 120   ;;  %s1658_s24 = sphi %s1831_s24, %s545_s24  }
 0x158   : >> { %1454 = vmatprep.subr.bf16.mxu1 %v1661_v19  ;;  %1448 = vmatprep.subr.bf16.mxu0 %v1661_v19  ;;  %s625_s28 = scalar_lea.vmem %s2017_s5, %s1309_s22  ;;  %s547_s20 = scalar_lea.vmem %s2016_s4, %s1309_s22  ;;  %v865_v54 = vld [vmem:[#allocation2] sm:$0xff] }
 0x159   : >> { %1384 = vmatprep.mubr.msk.f32.mxu1 %vm1662_vm1, %v1663_v20  ;;  %1373 = vmatprep.mubr.msk.f32.mxu0 %vm1662_vm1, %v1663_v20  ;;  %v626_v21 = vld [vmem:[%s625_s28] sm:$0xff]  ;;  %v627_v22 = vld [vmem:[%s625_s28 + $0x8] sm:$0xff]  ;;  %v628_v26 = vld [vmem:[%s625_s28 + $0x10] sm:$0xff] }
 0x15a   : >> { %v548_v23 = vld [vmem:[%s547_s20] sm:$0xff]  ;;  %v1455_v24 = vpack.c.bf16 %v627_v22, %v626_v21  ;;  %v549_v25 = vld [vmem:[%s547_s20 + $0x8] sm:$0xff]  ;;  %v629_v27 = vld [vmem:[%s625_s28 + $0x18] sm:$0xff] }
 0x15b   : >> { %v1449_v28 = vpack.c.bf16 %v549_v25, %v548_v23  ;;  %v550_v29 = vld [vmem:[%s547_s20 + $0x10] sm:$0xff]  ;;  %v551_v30 = vld [vmem:[%s547_s20 + $0x18] sm:$0xff]  ;;  %v1458_v31 = vpack.c.bf16 %v629_v27, %v628_v26  ;;  %s1315_s20 = sshll.u32 %s1658_s24, 3  ;;  %s545_s24 = sadd.s32 1, %s1658_s24  }
 0x15c   : >> { %1456 = vmatpush3.bf16.msra.mxu1 %v1455_v24  ;;  %v1452_v32 = vpack.c.bf16 %v551_v30, %v550_v29  ;;  %s867_s27 = scalar_lea.vmem %s2018_s6, %s1315_s20  ;;  %p542_p12 = scmp.ge.s32.totalorder %s545_s24, 4  }
 0x15d   : >> { %1450 = vmatpush3.bf16.msra.mxu0 %v1449_v28  ;;  %1457 = vmatprep.subr.bf16.mxu1 %v1661_v19  ;;  %v868_v48 = vld [vmem:[%s867_s27] sm:$0xff]  ;;  %v1665_v8 = vmov (%p542_p12), 0.0|0.0   ;;  %v986_v10 = vld [vmem:[%s2022_s10 + $0x18] sm:$0xff] (%p542_p12)  ;;  %vm1666_vm3 = vmmov (%p542_p12), 0   ;;  %v1095_v21 = vld [vmem:[%s2024_s12 + $0x8] sm:$0xff] (%p542_p12)  ;;  %s1324_s1 = sshll.u32 (%p542_p12), %s1646_s16, 7 }
 0x15e   : >> { %1451 = vmatprep.subr.bf16.mxu0 %v1661_v19  ;;  %v1317_v59 = vld [vmem:[%s2019_s7] ss:$0 sm:$0xff] (%p542_p12)  ;;  %v1096_v22 = vld [vmem:[%s2024_s12 + $0x10] sm:$0xff] (%p542_p12)  ;;  %v1097_v24 = vld [vmem:[%s2024_s12 + $0x18] sm:$0xff] (%p542_p12)  ;;  %s1960_s27 = scalar_lea.hbm (%p542_p12), %s2026_s14, %s1324_s1  ;;  %s2041_s16 = sand.u32 (%p542_p12), 1, %s1638_s30  }
 0x15f   : > { %v983_v2 = vld [vmem:[%s2022_s10] sm:$0xff] (%p542_p12)  ;;  %v1470_v25 = vpack.c.bf16 (%p542_p12), %v1097_v24, %v1096_v22  ;;  %v1099_v27 = vld [vmem:[%s2024_s12 + $0x28] sm:$0xff] (%p542_p12)  ;;  %v1100_v29 = vld [vmem:[%s2024_s12 + $0x30] sm:$0xff] (%p542_p12)  ;;  %s1191_s28 = scalar_lea.sflag (%p542_p12), [#allocation4], %s2041_s16  ;;  %s1667_s24 = smov (%p542_p12), [#allocation3]  }
 0x160   : >> { %1459 = vmatpush3.bf16.msra.mxu1 %v1458_v31  ;;  %v1318_v16 = vld [vmem:[%s2020_s8] ss:$0 sm:$0xff] (%p542_p12)  ;;  %v1101_v30 = vld [vmem:[%s2024_s12 + $0x38] sm:$0xff] (%p542_p12) }
 0x161   : >> { %1453 = vmatpush3.bf16.msra.mxu0 %v1452_v32  ;;  %1392 = vmatprep.subr.mxu1 %v1663_v20  ;;  %v1098_v26 = vld [vmem:[%s2024_s12 + $0x20] sm:$0xff] (%p542_p12)  ;;  %v1476_v31 = vpack.c.bf16 (%p542_p12), %v1101_v30, %v1100_v29 }
 0x162   : >> { %1387 = vmatprep.subr.mxu0 %v1663_v20  ;;  %v1473_v28 = vpack.c.bf16 (%p542_p12), %v1099_v27, %v1098_v26  ;;  %v1102_v32 = vld [vmem:[%s2024_s12 + $0x40] sm:$0xff] (%p542_p12) }
 0x163   : >> { %1385 = vmatmul.mubr.msk.f32.vlgmr.msra.gmra.mrb[0].mxu1 %vm508_vm0, %v1828_v18 }
 0x164   : >> { %1374 = vmatmul.mubr.msk.f32.vlgmr.msra.gmra.mrb[0].mxu0 %vm508_vm0, %v1828_v18  ;;  %1394 = vmatprep.mubr.msk.f32.mxu1 %vm1662_vm1, %v1663_v20  ;;  %v1319_v18 = vld [vmem:[%s2021_s9] ss:$0 sm:$0xff] (%p542_p12) }
 0x165   : >> { %1389 = vmatprep.mubr.msk.f32.mxu0 %vm1662_vm1, %v1663_v20 }
 0x236   : >> { %v696_v33 = vpop.f32.mrb[0].mxu1 }
 0x237   : >> { %789 = vrot.lane.b32.xlu1 %v696_v33, %s1664_s17  ;;  %v621_v34 = vpop.f32.mrb[0].mxu0  ;;  %v1386_v35 = vpop.f32.mrb[1].mxu1  ;;  %1388 = vmatpush3.xpose.msk.msra.mxu0 %vm701_vm2, %v696_v33  ;;  %v1103_v33 = vld [vmem:[%s2024_s12 + $0x48] sm:$0xff] (%p542_p12)  ;;  %s2039_s17 = scalar_lea.vmem (%p542_p12), [#allocation3], %s1820_s21 }
 0x238   : >> { %v700_v36 = vmul.f32 0.35355338, %v621_v34  ;;  %v1375_v37 = vpop.f32.mrb[1].mxu0  ;;  %1397 = vmatprep.subr.mxu0 %v1663_v20  ;;  %v1479_v34 = vpack.c.bf16 (%p542_p12), %v1103_v33, %v1102_v32  ;;  %v1104_v35 = vld [vmem:[%s2024_s12 + $0x50] sm:$0xff] (%p542_p12)  ;;  %s1205_s20 = sshll.u32 (%p542_p12), %s2039_s17, 4  ;;  %s2040_s0 = smov (%p542_p12), %s2039_s17  ;;  %s1962_s20 = int_to_ptr.vmem [resolvable:$true] %s1205_s20 }
 0x239   : > { %s1572_s19 = scalar_lea.vmem (%p542_p12), %s1962_s20, 128  ;;  %s1576_s17 = sshll.u32 (%p542_p12), %s1667_s24, 4  ;;  %s1577_s17 = int_to_ptr.vmem [resolvable:$false] %s1576_s17 }
 0x23a   : >> { %1390 = vmatmul.mubr.msk.f32.vlgmr.msra.gmra.mrb[2].mxu0 %vm701_vm2, %v700_v36  ;;  %v1105_v36 = vld [vmem:[%s2024_s12 + $0x58] sm:$0xff] (%p542_p12)  ;;  %p1573_p13 = scmp.ne.s32.totalorder (%p542_p12), %s1962_s20, %s1572_s19  ;;  %s1578_s1 = scalar_lea.vmem (%p542_p12), %s1577_s17, 256 }
 0x23b   : >> { %1399 = vmatprep.mubr.msk.f32.mxu0 %vm1662_vm1, %v1663_v20  ;;  %1398 = vmatpush3.msra.mxu0 %v868_v48  ;;  %v1094_v20 = vld [vmem:[%s2024_s12] sm:$0xff] (%p542_p12)  ;;  %v1482_v37 = vpack.c.bf16 (%p542_p12), %v1105_v36, %v1104_v35  ;;  %p1579_p2 = scmp.lt.s32.totalorder (%p542_p12), %s1962_s20, %s1577_s17  ;;  %p1580_p3 = scmp.lt.s32.totalorder (%p542_p12), %s1578_s1, %s1572_s19 }
 0x23c   : > { %1460 = vmatprep.subr.bf16.mxu0 (%p542_p12), %v1665_v8  ;;  %v1467_v23 = vpack.c.bf16 (%p542_p12), %v1095_v21, %v1094_v20  ;;  %p1574_p0 = pnand (%p542_p12), %p1573_p13, %p1783_p4 }
 0x23d   : > { %p1581_p5 = por (%p542_p12), %p1580_p3, %p1579_p2 }
 0x23e   : > { %p1575_p1 = pneg (%p542_p12), %p1574_p0 }
 0x240   : > { %p1582_p6 = pnand (%p542_p12), %p1581_p5, %p1575_p1 }
 0x2a9   : >> { %v790_v38 = vpop.permute.xlu1 %789 }
 0x2aa   : >> { %1393 = vmatpush3.msra.mxu1 %v790_v38  ;;  %v1106_v38 = vld [vmem:[%s2024_s12 + $0x60] sm:$0xff] (%p542_p12) }
 0x2ab   : > { %1466 = vmatprep.subr.bf16.mxu1 (%p542_p12), %v1665_v8 }
 0x30d   : >> { %v774_v39 = vpop.f32.mrb[2].mxu0 }
 0x30e   : >> { %v775_v40 = vadd.f32 %v774_v39, %v538_v4  ;;  %v1391_v41 = vpop.f32.mrb[3].mxu0  ;;  %v985_v4 = vld [vmem:[%s2022_s10 + $0x10] sm:$0xff] (%p542_p12)  ;;  %v1107_v39 = vld [vmem:[%s2024_s12 + $0x68] sm:$0xff] (%p542_p12) }
 0x30f   : > { %v1464_v11 = vpack.c.bf16 (%p542_p12), %v986_v10, %v985_v4  ;;  %v1108_v41 = vld [vmem:[%s2024_s12 + $0x70] sm:$0xff] (%p542_p12) }
 0x310   : >> { %v778_v42 = vsel %vm701_vm2, %v775_v40, -inf }
 0x311   : >> { %779 = vmax.xlane.f32.xlu0 %v778_v42  ;;  %v1109_v42 = vld [vmem:[%s2024_s12 + $0x78] sm:$0xff] (%p542_p12) }
 0x39e   : >> { %v780_v43 = vpop.xlane.xlu0 %779 }
 0x39f   : >> { %v781_v44 = vsub.f32 %v775_v40, %v780_v43  ;;  %v1485_v40 = vpack.c.bf16 (%p542_p12), %v1107_v39, %v1106_v38  ;;  %v1488_v43 = vpack.c.bf16 (%p542_p12), %v1109_v42, %v1108_v41 }
 0x3a1   : >> { %v782_v45 = vmul.f32 1.442695, %v781_v44  ;;  %v1320_v44 = vld [vmem:[%s2023_s11] ss:$0 sm:$0xff] (%p542_p12) }
 0x3a3   : >> { %1562 = vpow2.f32 %v782_v45 }
 0x3ad   : >> { %v1563_v46 = vpop.eup %1562 }
 0x3ae   : >> { %v784_v47 = vsel %vm701_vm2, %v1563_v46, 0.0 }
 0x3af   : >> { %785 = vadd.xlane.f32.xlu0 %v784_v47 }
 0x43c   : >> { %v786_v49 = vpop.xlane.xlu0 %785 }
 0x43d   : >> { %1564 = vrcp.f32 %v786_v49 }
 0x447   : >> { %v1565_v50 = vpop.eup %1564 }
 0x448   : >> { %v788_v51 = vmul.f32 %v1565_v50, %v1563_v46 }
 0x44a   : >> { %1395 = vmatmul.mubr.msk.f32.vlgmr.msra.gmra.mrb[2].mxu1 %vm701_vm2, %v788_v51 }
 0x44b   : > { %1445 = vmatprep.mubr.msk.f32.mxu1 (%p542_p12), %vm1666_vm3, %v1660_v0  ;;  %1468 = vmatpush3.bf16.msra.mxu1 (%p542_p12), %v1467_v23 }
 0x44c   : > { %1469 = vmatprep.subr.bf16.mxu1 (%p542_p12), %v1665_v8 }
 0x44f   : > { %1471 = vmatpush3.bf16.msra.mxu1 (%p542_p12), %v1470_v25 }
 0x450   : > { %1472 = vmatprep.subr.bf16.mxu1 (%p542_p12), %v1665_v8 }
 0x453   : > { %1474 = vmatpush3.bf16.msra.mxu1 (%p542_p12), %v1473_v28 }
 0x454   : > { %1475 = vmatprep.subr.bf16.mxu1 (%p542_p12), %v1665_v8 }
 0x457   : > { %1477 = vmatpush3.bf16.msra.mxu1 (%p542_p12), %v1476_v31 }
 0x458   : > { %1478 = vmatprep.subr.bf16.mxu1 (%p542_p12), %v1665_v8 }
 0x45b   : > { %1480 = vmatpush3.bf16.msra.mxu1 (%p542_p12), %v1479_v34 }
 0x45c   : > { %1481 = vmatprep.subr.bf16.mxu1 (%p542_p12), %v1665_v8 }
 0x45f   : > { %1483 = vmatpush3.bf16.msra.mxu1 (%p542_p12), %v1482_v37 }
 0x460   : > { %1484 = vmatprep.subr.bf16.mxu1 (%p542_p12), %v1665_v8 }
 0x463   : > { %1486 = vmatpush3.bf16.msra.mxu1 (%p542_p12), %v1485_v40 }
 0x464   : > { %1487 = vmatprep.subr.bf16.mxu1 (%p542_p12), %v1665_v8 }
 0x467   : > { %1489 = vmatpush3.bf16.msra.mxu1 (%p542_p12), %v1488_v43 }
 0x51d   : >> { %v861_v52 = vpop.f32.mrb[2].mxu1 }
 0x51e   : >> { %v1396_v53 = vpop.f32.mrb[3].mxu1  ;;  %1400 = vmatmul.mubr.msk.f32.vlgmr.msra.gmra.mrb[4].mxu0 %vm701_vm2, %v861_v52 }
 0x51f   : > { %1410 = vmatprep.mubr.msk.f32.mxu0 (%p542_p12), %vm1666_vm3, %v1660_v0 }
 0x5ee   : > { %544 = sbr.rel (!%p542_p12) target bundleno = 343 (0x157), region = 124 }
 0x5f1   : >> { %v938_v55 = vpop.f32.mrb[4].mxu0 }
 0x5f2   : >> { %v942_v56 = vadd.f32 %v938_v55, %v865_v54  ;;  %v1401_v57 = vpop.f32.mrb[5].mxu0 }
 0x5f4   : >> { %943 = vst.msk [vmem:[#allocation2] sm:$0xff] %vm508_vm0, %v942_v56 }
 0x5fb   : > { %v944_v58 = vld [vmem:[#allocation2] sm:$0xff] }
 0x5fc   : > { %v945_v60 = vadd.f32 %v944_v58, %v1808_v1  ;;  %v984_v1 = vld [vmem:[%s2022_s10 + $0x8] sm:$0xff] }
 0x5fd   : > { %v1461_v9 = vpack.c.bf16 %v984_v1, %v983_v2 }
 0x5fe   : > { %v1872_v61 = vadd.f32 %v1317_v59, %v945_v60 }
 0x5ff   : > { %1462 = vmatpush3.bf16.msra.mxu0 %v1461_v9 }
 0x600   : > { %v956_v62 = vsel %vm508_vm0, %v1872_v61, 0.0  ;;  %1463 = vmatprep.subr.bf16.mxu0 %v1665_v8 }
 0x601   : > { %957 = vadd.xlane.f32.xlu0 %v956_v62 }
 0x603   : > { %1465 = vmatpush3.bf16.msra.mxu0 %v1464_v11 }
 0x68e   : > { %v958_v63 = vpop.xlane.xlu0 %957 }
 0x68f   : > { %v959_v3 = vmul.f32 0.03125, %v958_v63 }
 0x691   : > { %v960_v5 = vsub.f32 %v1872_v61, %v959_v3 }
 0x693   : > { %v961_v6 = vmul.f32 %v960_v5, %v960_v5 }
 0x695   : > { %v962_v7 = vsel %vm508_vm0, %v961_v6, 0.0 }
 0x696   : > { %963 = vadd.xlane.f32.xlu0 %v962_v7 }
 0x723   : > { %v964_v12 = vpop.xlane.xlu0 %963 }
 0x724   : > { %v965_v13 = vmul.f32 0.03125, %v964_v12  ;;  %v1322_v12 = vld [vmem:[%s2025_s13] ss:$0 sm:$0xff] }
 0x726   : > { %v966_v14 = vadd.f32 1e-05, %v965_v13 }
 0x728   : > { %1566 = vrsqrt.f32 %v966_v14 }
 0x732   : > { %v1567_v15 = vpop.eup %1566 }
 0x733   : > { %v968_v17 = vmul.f32 %v1567_v15, %v960_v5 }
 0x735   : > { %v975_v19 = vmul.f32 %v1318_v16, %v968_v17 }
 0x737   : > { %v982_v0 = vadd.f32 %v1319_v18, %v975_v19 }
 0x739   : > { %1411 = vmatmul.mubr.msk.f32.vlgmr.msra.gmra.mrb[0].mxu0 %vm508_vm0, %v982_v0 }
 0x80c   : > { %v1063_v45 = vpop.f32.mrb[0].mxu0 }
 0x80d   : > { %v1064_v46 = vadd.f32 %v1320_v44, %v1063_v45  ;;  %v1412_v47 = vpop.f32.mrb[1].mxu0 }
 0x80f   : > { %v1068_v48 = vmul.f32 0.70710677, %v1064_v46  ;;  %v1067_v8 = vmul.f32 0.5, %v1064_v46 }
 0x811   : > { %v1069_v49 = vand.u32 2147483647, %v1068_v48  ;;  %vm1089_vm4 = vcmp.lt.f32.partialorder %v1068_v48, 0.0 }
 0x813   : > { %v1070_v50 = vmul.f32 0.3275911, %v1069_v49  ;;  %v1083_v52 = vsub.f32 0.0, %v1069_v49 }
 0x815   : > { %v1071_v51 = vadd.f32 1.0, %v1070_v50  ;;  %v1084_v54 = vmul.f32 %v1083_v52, %v1069_v49 }
 0x817   : > { %1568 = vrcp.f32 %v1071_v51  ;;  %v1085_v57 = vmul.f32 1.442695, %v1084_v54 }
 0x819   : > { %1570 = vpow2.f32 %v1085_v57 }
 0x821   : > { %v1569_v53 = vpop.eup %1568 }
 0x822   : > { %v1074_v55 = vmul.f32 1.0614054, %v1569_v53 }
 0x823   : > { %v1571_v6 = vpop.eup %1570 }
 0x824   : > { %v1075_v56 = vadd.f32 -1.4531521, %v1074_v55 }
 0x826   : > { %v1076_v58 = vmul.f32 %v1569_v53, %v1075_v56 }
 0x828   : > { %v1077_v59 = vadd.f32 1.4214138, %v1076_v58 }
 0x82a   : > { %v1078_v60 = vmul.f32 %v1569_v53, %v1077_v59 }
 0x82c   : > { %v1079_v62 = vadd.f32 -0.28449672, %v1078_v60 }
 0x82e   : > { %v1080_v63 = vmul.f32 %v1569_v53, %v1079_v62 }
 0x830   : > { %v1081_v3 = vadd.f32 0.2548296, %v1080_v63 }
 0x832   : > { %v1082_v5 = vmul.f32 %v1569_v53, %v1081_v3 }
 0x834   : > { %v1087_v7 = vmul.f32 %v1571_v6, %v1082_v5 }
 0x836   : > { %v1088_v2 = vsub.f32 1.0, %v1087_v7 }
 0x838   : > { %v1090_v1 = vsub.f32 0.0, %v1088_v2 }
 0x83a   : > { %v1091_v4 = vsel %vm1089_vm4, %v1090_v1, %v1088_v2 }
 0x83b   : > { %v1092_v9 = vadd.f32 1.0, %v1091_v4 }
 0x83d   : > { %v1093_v10 = vmul.f32 %v1092_v9, %v1067_v8 }
 0x83f   : > { %1446 = vmatmul.mubr.f32.vlgmr.msra.gmra.mrb[0].mxu1 %v1093_v10 }
 0x912   : > { %v1176_v11 = vpop.f32.mrb[0].mxu1 }
 0x913   : > { %v1180_v13 = vadd.f32 %v1176_v11, %v1872_v61  ;;  %v1447_v14 = vpop.f32.mrb[1].mxu1 }
 0x915   : > { %v1188_v15 = vadd.f32 %v1322_v12, %v1180_v13 }
 0x917   : > { %1189 = vst.msk [vmem:[%s2040_s0] sm:$0xff] %vm508_vm0, %v1188_v15 }
 0x918   : > { %1585 = shalt.err (!%p1582_p6)
}
 0x919   : > { %s1586_s21 = scalar_lea.hbm %s1960_s27, 128  ;;  %s1590_s0 = scalar_lea.hbm %s2026_s14, 256 }
 0x91a   : > { %p1587_p7 = scmp.ne.s32.totalorder %s1960_s27, %s1586_s21  ;;  %p1591_p11 = scmp.lt.u32.totalorder %s1960_s27, %s2026_s14 }
 0x91b   : > { %p1592_p12 = scmp.lt.u32.totalorder %s1590_s0, %s1586_s21  ;;  %p1594_p0 = scmp.lt.u32.totalorder %s1586_s21, %s1960_s27 }
 0x91c   : > { %p1588_p9 = pnand %p1587_p7, %p1783_p4 }
 0x91d   : > { %p1593_p13 = por %p1592_p12, %p1591_p11 }
 0x91e   : > { %p1589_p10 = pneg %p1588_p9 }
 0x91f   : > { %p1595_p1 = por %p1594_p0, %p1593_p13 }
 0x921   : > { %p1596_p2 = pnand %p1595_p1, %p1589_p10 }
 0x923   : > { %1599 = shalt.err (!%p1596_p2)
}
 0x924   : > { %1490 = dma.vmem_to_hbm [thread:$0]  (%p1783_p4), %s1962_s20, 128, %s1960_s27, %s1191_s28  }
 0x925 PF: > { %p1496_p3 = scmp.ge.s32.totalorder %s1654_s18, 2  ;;  %s1217_s19 = sand.u32 1, %s1634_s29  }
 0x926   : > { %s1218_s17 = scalar_lea.sflag [#allocation4], %s1217_s19 }
 0x927   : > { %p1493_p5 = pnand %p1496_p3, %p1790_p8 }
 0x929   : > { %1629 = dma.done.wait (!%p1493_p5), %s1218_s17, 128  }
 0x92a   : > { %1631 = vsyncadd (!%p1493_p5), %s1218_s17, 4294967168  ;;  %s27_s18 = sadd.s32 1, %s1654_s18   ;;  %s2042_s23 = sld [smem:[#allocation8_spill]] }
 0x92b   : > { %p24_p6 = scmp.ge.s32.totalorder %s27_s18, 4   ;;  %s2043_s16 = sld [smem:[#allocation6_spill]] }
 0x92c   : > { %s2044_s17 = sld [smem:[#allocation7_spill]]  ;;  %s2045_s29 = smov %s1638_s30 }
 0x92d   : > { %s2046_s30 = smov %s1642_s15  ;;  %26 = sbr.rel (!%p24_p6) target bundleno = 7 (0x7), region = 135 }
 0x930   : > { %s2047_s15 = smov %s2042_s23 }
 0x934   :  { %1223 = vsyncpa [#allocation4], 1 }
 0x935   :  { %1225 = vsyncpa [#allocation4 + $0x1], 1 }

</bundles_post_ra>
